<compile_context>
chip_gen: v6e
topology: v6e:2x2x1
jax: 0.10.0
libtpu: 0.0.40
codegen_flags: <defaults>
</compile_context>

<pallas_src>
import jax
import jax.numpy as jnp
from jax.experimental import pallas as pl
from jax.experimental.pallas import tpu as pltpu


def _ceil_to(v, m):
    return ((v + m - 1) // m) * m


def _silu(x, approx):
    # x is f32.  exp() already goes to the EUP; with approx=True the reciprocal
    # does too, keeping the divide off the VALU.  approx=False keeps an exact
    # divide for the strict correctness check.
    z = 1.0 + jnp.exp(-x)
    if approx:
        return x * pl.reciprocal(z, approx=True)
    return x / z


_TAPS = tuple((dy, dx) for dy in (-1, 0, 1) for dx in (-1, 0, 1))


def _vmem_limit_bytes():
    # Per-generation scoped-VMEM limit: don't impose the v7x ceiling on the
    # 128-MiB parts (v5e/v6e).  Fall back to a safe 48 MiB if the query fails.
    try:
        cap = getattr(pltpu.get_tpu_info(), "vmem_capacity_bytes", None)
        if cap and cap >= 100 * 1024 * 1024:          # v5e / v6e: 128 MiB
            return 96 * 1024 * 1024
    except Exception:
        pass
    return 48 * 1024 * 1024                           # v7x: 64 MiB physical


# ------------------------------ fused kernel --------------------------------

def _make_c3_kernel(n, shortcut, H, W, S, halo, mxu_dtype, approx_silu):
    """Fused C3 body for one (batch, row-strip) grid step."""
    R = S + 2 * halo          # input rows in the strip (incl. halo)
    RW = R * W

    def kernel(cr_ref, x_ref, *refs):
        o_ref = refs[-1]
        wr = refs[:-1]
        cv1_w, cv1_b, cv2_w, cv2_b = wr[0], wr[1], wr[2], wr[3]
        cv3_wa, cv3_wb, cv3_b = wr[-3], wr[-2], wr[-1]
        m_wr = wr[4:-3]

        s_idx = pl.program_id(1)

        # Absolute image coordinates of every position in this strip.  The
        # column / strip-local-row planes are host precomputed; only a scalar
        # offset add and the boundary compares happen per grid step.
        cr = cr_ref[...]                              # (2, RW) int32
        xi = cr[0:1, :]                               # column in [0, W)
        yi = cr[1:2, :] + (s_idx * S - halo)          # absolute image row
        row_ok = {dy: (yi + dy >= 0) & (yi + dy < H) for dy in (-1, 0, 1)}
        col_ok = {dx: (xi + dx >= 0) & (xi + dx < W) for dx in (-1, 0, 1)}

        def matmul(w_ref, t):
            return jnp.dot(w_ref[...], t.astype(mxu_dtype),
                           preferred_element_type=jnp.float32)

        def pw(w_ref, b_ref, t):                      # 1x1 conv + BN + SiLU
            return _silu(matmul(w_ref, t) + b_ref[...], approx_silu)

        def conv3x3(w9_ref, b_ref, t):
            # 3x3 conv as 9 accumulating K=C matmuls on XLU-rolled views of t
            # (no 9*C*HW im2col materialisation, no concat copy).
            tm = t.astype(mxu_dtype)
            acc = None
            for ti, (dy, dx) in enumerate(_TAPS):
                s = dy * W + dx                       # flat spatial offset
                if s == 0:
                    src = tm                          # centre tap, no mask
                else:
                    src = pltpu.roll(tm, (-s) % RW, 1)      # src[p] = tm[p+s]
                    m = row_ok[dy] & col_ok[dx]
                    src = jnp.where(m, src, jnp.zeros((), tm.dtype))
                part = jnp.dot(w9_ref[ti], src,
                               preferred_element_type=jnp.float32)
                acc = part if acc is None else acc + part
            return _silu(acc + b_ref[...], approx_silu)

        x = x_ref[0, 0].astype(jnp.float32)           # (c1, RW)
        a = pw(cv1_w, cv1_b, x)                       # (cp, RW)  m(...) path
        bypass = pw(cv2_w, cv2_b, x)                  # (cp, RW)  cv2 path
        for i in range(n):                            # Bottleneck(c_, c_, ...)
            m1_w, m1_b, m2_w9, m2_b = m_wr[4 * i:4 * i + 4]
            t = pw(m1_w, m1_b, a)                     # 1x1
            y = conv3x3(m2_w9, m2_b, t)               # 3x3 (consumes 1 halo row)
            a = a + y if shortcut else y
        # cv3 on the (virtual) channel concat: two accumulating matmuls.
        out = _silu(matmul(cv3_wa, a) + matmul(cv3_wb, bypass) + cv3_b[...],
                    approx_silu)
        # Keep only the S central (non-halo) rows of the strip.
        o_ref[0] = out[:, halo * W: halo * W + S * W].astype(o_ref.dtype)

    return kernel


def c3_forward_pallas(x_nchw, packed, shortcut, *, strip_rows=8,
                      approx_silu=True):
    """Fused C3 forward.  x_nchw: (B, c1, H, W) -> (B, c2, H, W)."""
    B, c1, H, W = x_nchw.shape
    n = len(packed["m"])
    cp, c2p, c2 = packed["cp"], packed["c2p"], packed["c2"]
    mxu_dtype = packed["mxu_dtype"]

    halo = n                              # one halo row per chained 3x3 conv
    S = min(strip_rows, H)                # output rows per grid step
    n_strips = pl.cdiv(H, S)
    H_out = n_strips * S                  # padded output rows (sliced below)
    R = S + 2 * halo
    RW, SW = R * W, S * W

    # Host-side: overlapping row strips (halo recompute happens in-kernel).
    # One extra copy of x; buys per-strip VMEM working sets + pipelined strips.
    xp = jnp.pad(x_nchw, ((0, 0), (0, 0), (halo, halo + H_out - H), (0, 0)))
    x_strips = jnp.stack(
        [xp[:, :, s * S:s * S + R, :] for s in range(n_strips)],
        axis=1).reshape(B, n_strips, c1, RW)

    # Column / strip-local-row index planes (kills per-step % and // on VPU).
    p = jnp.arange(RW, dtype=jnp.int32)
    colrow = jnp.stack([p % W, p // W]).astype(jnp.int32)       # (2, RW)

    flat = [packed["cv1"][0], packed["cv1"][1],
            packed["cv2"][0], packed["cv2"][1]]
    for (w1, b1), (w9, b2) in packed["m"]:
        flat += [w1, b1, w9, b2]
    flat += [packed["cv3"][0], packed["cv3"][1], packed["cv3"][2]]

    def const_spec(a):
        zeros = (0,) * a.ndim
        return pl.BlockSpec(a.shape, lambda b, s: zeros)

    kernel = _make_c3_kernel(n, shortcut, H, W, S, halo, mxu_dtype, approx_silu)

    out = pl.pallas_call(
        kernel,
        out_shape=jax.ShapeDtypeStruct((B, c2p, H_out * W), x_nchw.dtype),
        grid=(B, n_strips),
        in_specs=[const_spec(colrow),
                  pl.BlockSpec((1, 1, c1, RW), lambda b, s: (b, s, 0, 0))]
                 + [const_spec(a) for a in flat],
        out_specs=pl.BlockSpec((1, c2p, SW), lambda b, s: (b, 0, s)),
        compiler_params=pltpu.CompilerParams(
            dimension_semantics=("parallel", "parallel"),
            vmem_limit_bytes=_vmem_limit_bytes()),
    )(colrow, x_strips, *flat)

    out = out[:, :c2, :].reshape(B, c2, H_out, W)
    return out[:, :, :H, :]


# ----------------------- parameter setup (deterministic) --------------------

def make_conv_params(key, cout, cin, k):
    """Conv2d weight (OIHW, no bias) + BatchNorm2d params, folded into (w, b)."""
    kw, kg, kb, km, kv = jax.random.split(key, 5)
    w = jax.random.normal(kw, (cout, cin, k, k), jnp.float32) * 0.1
    gamma = jax.random.uniform(kg, (cout,), jnp.float32, 0.5, 1.5)
    beta = jax.random.normal(kb, (cout,), jnp.float32) * 0.1
    mean = jax.random.normal(km, (cout,), jnp.float32) * 0.1
    var = jax.random.uniform(kv, (cout,), jnp.float32, 0.5, 1.5)
    eps = 1e-3  # ultralytics Conv uses BatchNorm2d(eps=0.001)
    scale = gamma / jnp.sqrt(var + eps)
    return w * scale[:, None, None, None], beta - mean * scale


def init_c3_params(key, c1, c2, n, e=0.5, mxu_dtype=jnp.float32):
    c_ = int(c2 * e)
    keys = jax.random.split(key, 3 + 2 * n)
    raw = {
        "cv1": make_conv_params(keys[0], c_, c1, 1),
        "cv2": make_conv_params(keys[1], c_, c1, 1),
        "cv3": make_conv_params(keys[2], c2, 2 * c_, 1),
        # Bottleneck(c_, c_, shortcut, g=1, k=((1,1),(3,3)), e=1.0)
        "m": [(make_conv_params(keys[3 + 2 * i], c_, c_, 1),
               make_conv_params(keys[4 + 2 * i], c_, c_, 3)) for i in range(n)],
    }

    cp, c2p = _ceil_to(c_, 8), _ceil_to(c2, 8)

    def pw_pack(wb, cinp, coutp):
        w, b = wb
        co, ci = w.shape[0], w.shape[1]
        wp = jnp.zeros((coutp, cinp), jnp.float32).at[:co, :ci].set(w[:, :, 0, 0])
        bp = jnp.zeros((coutp, 1), jnp.float32).at[:co, 0].set(b)
        return wp.astype(mxu_dtype), bp

    def k3_pack(wb, cinp, coutp):
        # (cout, cin, 3, 3) -> (9, coutp, cinp), tap index (dy+1)*3 + (dx+1).
        w, b = wb
        co, ci = w.shape[0], w.shape[1]
        wt = jnp.transpose(w, (2, 3, 0, 1)).reshape(9, co, ci)
        wp = jnp.zeros((9, coutp, cinp), jnp.float32).at[:, :co, :ci].set(wt)
        bp = jnp.zeros((coutp, 1), jnp.float32).at[:co, 0].set(b)
        return wp.astype(mxu_dtype), bp

    def cv3_pack(wb):
        # Split into the two halves of the (virtual) [a, bypass] concat.
        w, b = wb
        w2d = w[:, :, 0, 0]                                     # (c2, 2*c_)
        wa = jnp.zeros((c2p, cp), jnp.float32).at[:c2, :c_].set(w2d[:, :c_])
        wb2 = jnp.zeros((c2p, cp), jnp.float32).at[:c2, :c_].set(w2d[:, c_:])
        bp = jnp.zeros((c2p, 1), jnp.float32).at[:c2, 0].set(b)
        return wa.astype(mxu_dtype), wb2.astype(mxu_dtype), bp

    packed = {
        "c_": c_, "cp": cp, "c2p": c2p, "c2": c2, "mxu_dtype": mxu_dtype,
        "cv1": pw_pack(raw["cv1"], c1, cp),
        "cv2": pw_pack(raw["cv2"], c1, cp),
        "cv3": cv3_pack(raw["cv3"]),
        "m": [(pw_pack(m1, cp, cp), k3_pack(m2, cp, cp))
              for (m1, m2) in raw["m"]],
    }
    return raw, packed


# ----------------------- plain-JAX reference (NCHW) --------------------------

def _conv_bn_silu_ref(x, w, b, pad):
    y = jax.lax.conv_general_dilated(
        x, w, (1, 1), [(pad, pad), (pad, pad)],
        dimension_numbers=("NCHW", "OIHW", "NCHW"))
    y = y + b[None, :, None, None]
    return y * jax.nn.sigmoid(y)


def c3_forward_ref(x, raw, shortcut):
    a = _conv_bn_silu_ref(x, *raw["cv1"], pad=0)
    for (m1, m2) in raw["m"]:
        t = _conv_bn_silu_ref(a, *m1, pad=0)        # Bottleneck.cv1 (1x1)
        t = _conv_bn_silu_ref(t, *m2, pad=1)        # Bottleneck.cv2 (3x3)
        a = a + t if shortcut else t
    b = _conv_bn_silu_ref(x, *raw["cv2"], pad=0)
    cat = jnp.concatenate([a, b], axis=1)
    return _conv_bn_silu_ref(cat, *raw["cv3"], pad=0)


# ---------------------------------- main -------------------------------------

if __name__ == "__main__":
    B, H, W = 2, 16, 16
    c1, c2 = 8, 8

    key = jax.random.PRNGKey(0)
    kx, kp1, kp2 = jax.random.split(key, 3)
    x = jax.random.normal(kx, (B, c1, H, W), jnp.float32)

    # --- strict check: f32 MXU operands, exact SiLU, n=1 bottleneck ---------
    raw1, packed1 = init_c3_params(kp1, c1, c2, n=1, e=0.5,
                                   mxu_dtype=jnp.float32)
    out1 = jax.block_until_ready(
        c3_forward_pallas(x, packed1, shortcut=True, strip_rows=8,
                          approx_silu=False))
    ref1 = jax.block_until_ready(c3_forward_ref(x, raw1, shortcut=True))
    assert out1.shape == (B, c2, H, W), out1.shape
    err1 = float(jnp.max(jnp.abs(out1 - ref1)))
    assert jnp.allclose(out1, ref1, atol=1e-3, rtol=1e-3), err1

    # --- perf-mode check: bf16 MXU operands + EUP approx-reciprocal SiLU,
    #     n=2 bottlenecks (exercises the multi-row halo recompute) -----------
    raw2, packed2 = init_c3_params(kp2, c1, c2, n=2, e=0.5,
                                   mxu_dtype=jnp.bfloat16)
    out2 = jax.block_until_ready(
        c3_forward_pallas(x, packed2, shortcut=True, strip_rows=8,
                          approx_silu=True))
    ref2 = jax.block_until_ready(c3_forward_ref(x, raw2, shortcut=True))
    err2 = float(jnp.max(jnp.abs(out2 - ref2)))
    assert jnp.allclose(out2, ref2, atol=5e-2, rtol=5e-2), err2

    print("KERNEL_OK")
</pallas_src>

<mosaic_0001>
module attributes {stable_mosaic.version = 11 : i64} {
  func.func @kernel(%arg0: i32, %arg1: i32, %arg2: memref<2x160xi32, #tpu.memory_space<vmem>>, %arg3: memref<1x1x8x160xf32, #tpu.memory_space<vmem>>, %arg4: memref<8x8xf32, #tpu.memory_space<vmem>>, %arg5: memref<8x1xf32, #tpu.memory_space<vmem>>, %arg6: memref<8x8xf32, #tpu.memory_space<vmem>>, %arg7: memref<8x1xf32, #tpu.memory_space<vmem>>, %arg8: memref<8x8xf32, #tpu.memory_space<vmem>>, %arg9: memref<8x1xf32, #tpu.memory_space<vmem>>, %arg10: memref<9x8x8xf32, #tpu.memory_space<vmem>>, %arg11: memref<8x1xf32, #tpu.memory_space<vmem>>, %arg12: memref<8x8xf32, #tpu.memory_space<vmem>>, %arg13: memref<8x8xf32, #tpu.memory_space<vmem>>, %arg14: memref<8x1xf32, #tpu.memory_space<vmem>>, %arg15: memref<1x8x128xf32, #tpu.memory_space<vmem>>) attributes {dimension_semantics = [#tpu.dimension_semantics<parallel>, #tpu.dimension_semantics<parallel>], iteration_bounds = array<i64: 2, 2>, scalar_prefetch = 0 : i64, scratch_operands = 0 : i64, tpu.core_type = #tpu.core_type<tc>, window_params = [{pipeline_mode = #tpu.pipeline_mode<synchronous>, transform_indices = @transform_0, window_bounds = array<i64: 2, 160>}, {transform_indices = @transform_1, window_bounds = array<i64: 1, 1, 8, 160>}, {pipeline_mode = #tpu.pipeline_mode<synchronous>, transform_indices = @transform_2, window_bounds = array<i64: 8, 8>}, {pipeline_mode = #tpu.pipeline_mode<synchronous>, transform_indices = @transform_3, window_bounds = array<i64: 8, 1>}, {pipeline_mode = #tpu.pipeline_mode<synchronous>, transform_indices = @transform_4, window_bounds = array<i64: 8, 8>}, {pipeline_mode = #tpu.pipeline_mode<synchronous>, transform_indices = @transform_5, window_bounds = array<i64: 8, 1>}, {pipeline_mode = #tpu.pipeline_mode<synchronous>, transform_indices = @transform_6, window_bounds = array<i64: 8, 8>}, {pipeline_mode = #tpu.pipeline_mode<synchronous>, transform_indices = @transform_7, window_bounds = array<i64: 8, 1>}, {pipeline_mode = #tpu.pipeline_mode<synchronous>, transform_indices = @transform_8, window_bounds = array<i64: 9, 8, 8>}, {pipeline_mode = #tpu.pipeline_mode<synchronous>, transform_indices = @transform_9, window_bounds = array<i64: 8, 1>}, {pipeline_mode = #tpu.pipeline_mode<synchronous>, transform_indices = @transform_10, window_bounds = array<i64: 8, 8>}, {pipeline_mode = #tpu.pipeline_mode<synchronous>, transform_indices = @transform_11, window_bounds = array<i64: 8, 8>}, {pipeline_mode = #tpu.pipeline_mode<synchronous>, transform_indices = @transform_12, window_bounds = array<i64: 8, 1>}, {transform_indices = @transform_13, window_bounds = array<i64: 1, 8, 128>}]} {
    %c0 = arith.constant 0 : index
    %c0_0 = arith.constant 0 : index
    %0 = vector.load %arg2[%c0, %c0_0] : memref<2x160xi32, #tpu.memory_space<vmem>>, vector<2x160xi32>
    %1 = vector.extract_strided_slice %0 {offsets = [0, 0], sizes = [1, 160], strides = [1, 1]} : vector<2x160xi32> to vector<1x160xi32>
    %2 = vector.extract_strided_slice %0 {offsets = [1, 0], sizes = [1, 160], strides = [1, 1]} : vector<2x160xi32> to vector<1x160xi32>
    %c8_i32 = arith.constant 8 : i32
    %3 = arith.muli %arg1, %c8_i32 : i32
    %c1_i32 = arith.constant 1 : i32
    %4 = arith.subi %3, %c1_i32 : i32
    %5 = vector.broadcast %4 : i32 to vector<1x160xi32>
    %6 = arith.addi %2, %5 : vector<1x160xi32>
    %c-1_i32 = arith.constant -1 : i32
    %7 = vector.broadcast %c-1_i32 : i32 to vector<1x160xi32>
    %8 = arith.addi %6, %7 : vector<1x160xi32>
    %c0_i32 = arith.constant 0 : i32
    %9 = vector.broadcast %c0_i32 : i32 to vector<1x160xi32>
    %10 = arith.cmpi sge, %8, %9 : vector<1x160xi32>
    %c-1_i32_1 = arith.constant -1 : i32
    %11 = vector.broadcast %c-1_i32_1 : i32 to vector<1x160xi32>
    %12 = arith.addi %6, %11 : vector<1x160xi32>
    %c16_i32 = arith.constant 16 : i32
    %13 = vector.broadcast %c16_i32 : i32 to vector<1x160xi32>
    %14 = arith.cmpi slt, %12, %13 : vector<1x160xi32>
    %15 = arith.andi %10, %14 : vector<1x160xi1>
    %c0_i32_2 = arith.constant 0 : i32
    %16 = vector.broadcast %c0_i32_2 : i32 to vector<1x160xi32>
    %17 = arith.addi %6, %16 : vector<1x160xi32>
    %c0_i32_3 = arith.constant 0 : i32
    %18 = vector.broadcast %c0_i32_3 : i32 to vector<1x160xi32>
    %19 = arith.cmpi sge, %17, %18 : vector<1x160xi32>
    %c0_i32_4 = arith.constant 0 : i32
    %20 = vector.broadcast %c0_i32_4 : i32 to vector<1x160xi32>
    %21 = arith.addi %6, %20 : vector<1x160xi32>
    %c16_i32_5 = arith.constant 16 : i32
    %22 = vector.broadcast %c16_i32_5 : i32 to vector<1x160xi32>
    %23 = arith.cmpi slt, %21, %22 : vector<1x160xi32>
    %24 = arith.andi %19, %23 : vector<1x160xi1>
    %c1_i32_6 = arith.constant 1 : i32
    %25 = vector.broadcast %c1_i32_6 : i32 to vector<1x160xi32>
    %26 = arith.addi %6, %25 : vector<1x160xi32>
    %c0_i32_7 = arith.constant 0 : i32
    %27 = vector.broadcast %c0_i32_7 : i32 to vector<1x160xi32>
    %28 = arith.cmpi sge, %26, %27 : vector<1x160xi32>
    %c1_i32_8 = arith.constant 1 : i32
    %29 = vector.broadcast %c1_i32_8 : i32 to vector<1x160xi32>
    %30 = arith.addi %6, %29 : vector<1x160xi32>
    %c16_i32_9 = arith.constant 16 : i32
    %31 = vector.broadcast %c16_i32_9 : i32 to vector<1x160xi32>
    %32 = arith.cmpi slt, %30, %31 : vector<1x160xi32>
    %33 = arith.andi %28, %32 : vector<1x160xi1>
    %c-1_i32_10 = arith.constant -1 : i32
    %34 = vector.broadcast %c-1_i32_10 : i32 to vector<1x160xi32>
    %35 = arith.addi %1, %34 : vector<1x160xi32>
    %c0_i32_11 = arith.constant 0 : i32
    %36 = vector.broadcast %c0_i32_11 : i32 to vector<1x160xi32>
    %37 = arith.cmpi sge, %35, %36 : vector<1x160xi32>
    %c-1_i32_12 = arith.constant -1 : i32
    %38 = vector.broadcast %c-1_i32_12 : i32 to vector<1x160xi32>
    %39 = arith.addi %1, %38 : vector<1x160xi32>
    %c16_i32_13 = arith.constant 16 : i32
    %40 = vector.broadcast %c16_i32_13 : i32 to vector<1x160xi32>
    %41 = arith.cmpi slt, %39, %40 : vector<1x160xi32>
    %42 = arith.andi %37, %41 : vector<1x160xi1>
    %c0_i32_14 = arith.constant 0 : i32
    %43 = vector.broadcast %c0_i32_14 : i32 to vector<1x160xi32>
    %44 = arith.addi %1, %43 : vector<1x160xi32>
    %c0_i32_15 = arith.constant 0 : i32
    %45 = vector.broadcast %c0_i32_15 : i32 to vector<1x160xi32>
    %46 = arith.cmpi sge, %44, %45 : vector<1x160xi32>
    %c0_i32_16 = arith.constant 0 : i32
    %47 = vector.broadcast %c0_i32_16 : i32 to vector<1x160xi32>
    %48 = arith.addi %1, %47 : vector<1x160xi32>
    %c16_i32_17 = arith.constant 16 : i32
    %49 = vector.broadcast %c16_i32_17 : i32 to vector<1x160xi32>
    %50 = arith.cmpi slt, %48, %49 : vector<1x160xi32>
    %51 = arith.andi %46, %50 : vector<1x160xi1>
    %c1_i32_18 = arith.constant 1 : i32
    %52 = vector.broadcast %c1_i32_18 : i32 to vector<1x160xi32>
    %53 = arith.addi %1, %52 : vector<1x160xi32>
    %c0_i32_19 = arith.constant 0 : i32
    %54 = vector.broadcast %c0_i32_19 : i32 to vector<1x160xi32>
    %55 = arith.cmpi sge, %53, %54 : vector<1x160xi32>
    %c1_i32_20 = arith.constant 1 : i32
    %56 = vector.broadcast %c1_i32_20 : i32 to vector<1x160xi32>
    %57 = arith.addi %1, %56 : vector<1x160xi32>
    %c16_i32_21 = arith.constant 16 : i32
    %58 = vector.broadcast %c16_i32_21 : i32 to vector<1x160xi32>
    %59 = arith.cmpi slt, %57, %58 : vector<1x160xi32>
    %60 = arith.andi %55, %59 : vector<1x160xi1>
    %c0_22 = arith.constant 0 : index
    %c0_23 = arith.constant 0 : index
    %c0_24 = arith.constant 0 : index
    %c0_25 = arith.constant 0 : index
    %61 = vector.load %arg3[%c0_22, %c0_23, %c0_24, %c0_25] : memref<1x1x8x160xf32, #tpu.memory_space<vmem>>, vector<1x1x8x160xf32>
    %62 = vector.shape_cast %61 : vector<1x1x8x160xf32> to vector<8x160xf32>
    %c0_26 = arith.constant 0 : index
    %c0_27 = arith.constant 0 : index
    %63 = vector.load %arg4[%c0_26, %c0_27] : memref<8x8xf32, #tpu.memory_space<vmem>>, vector<8x8xf32>
    %cst = arith.constant dense<0.000000e+00> : vector<8x160xf32>
    %64 = tpu.matmul %63, %62, %cst {dimension_numbers = #tpu.dot_dimension_numbers<[1], [0], [0], [1], [0, 0, 1, 1], [], []>} : vector<8x8xf32>, vector<8x160xf32>, vector<8x160xf32> -> vector<8x160xf32>
    %c0_28 = arith.constant 0 : index
    %c0_29 = arith.constant 0 : index
    %65 = vector.load %arg5[%c0_28, %c0_29] : memref<8x1xf32, #tpu.memory_space<vmem>>, vector<8x1xf32>
    %66 = vector.broadcast %65 : vector<8x1xf32> to vector<8x160xf32>
    %67 = arith.addf %64, %66 : vector<8x160xf32>
    %cst_30 = arith.constant 0.000000e+00 : f32
    %68 = vector.broadcast %cst_30 : f32 to vector<8x160xf32>
    %69 = arith.subf %68, %67 : vector<8x160xf32>
    %70 = math.exp %69 : vector<8x160xf32>
    %cst_31 = arith.constant 1.000000e+00 : f32
    %71 = vector.broadcast %cst_31 : f32 to vector<8x160xf32>
    %72 = arith.addf %71, %70 : vector<8x160xf32>
    %73 = arith.divf %67, %72 : vector<8x160xf32>
    %c0_32 = arith.constant 0 : index
    %c0_33 = arith.constant 0 : index
    %74 = vector.load %arg6[%c0_32, %c0_33] : memref<8x8xf32, #tpu.memory_space<vmem>>, vector<8x8xf32>
    %cst_34 = arith.constant dense<0.000000e+00> : vector<8x160xf32>
    %75 = tpu.matmul %74, %62, %cst_34 {dimension_numbers = #tpu.dot_dimension_numbers<[1], [0], [0], [1], [0, 0, 1, 1], [], []>} : vector<8x8xf32>, vector<8x160xf32>, vector<8x160xf32> -> vector<8x160xf32>
    %c0_35 = arith.constant 0 : index
    %c0_36 = arith.constant 0 : index
    %76 = vector.load %arg7[%c0_35, %c0_36] : memref<8x1xf32, #tpu.memory_space<vmem>>, vector<8x1xf32>
    %77 = vector.broadcast %76 : vector<8x1xf32> to vector<8x160xf32>
    %78 = arith.addf %75, %77 : vector<8x160xf32>
    %cst_37 = arith.constant 0.000000e+00 : f32
    %79 = vector.broadcast %cst_37 : f32 to vector<8x160xf32>
    %80 = arith.subf %79, %78 : vector<8x160xf32>
    %81 = math.exp %80 : vector<8x160xf32>
    %cst_38 = arith.constant 1.000000e+00 : f32
    %82 = vector.broadcast %cst_38 : f32 to vector<8x160xf32>
    %83 = arith.addf %82, %81 : vector<8x160xf32>
    %84 = arith.divf %78, %83 : vector<8x160xf32>
    %c0_39 = arith.constant 0 : index
    %c0_40 = arith.constant 0 : index
    %85 = vector.load %arg8[%c0_39, %c0_40] : memref<8x8xf32, #tpu.memory_space<vmem>>, vector<8x8xf32>
    %cst_41 = arith.constant dense<0.000000e+00> : vector<8x160xf32>
    %86 = tpu.matmul %85, %73, %cst_41 {dimension_numbers = #tpu.dot_dimension_numbers<[1], [0], [0], [1], [0, 0, 1, 1], [], []>} : vector<8x8xf32>, vector<8x160xf32>, vector<8x160xf32> -> vector<8x160xf32>
    %c0_42 = arith.constant 0 : index
    %c0_43 = arith.constant 0 : index
    %87 = vector.load %arg9[%c0_42, %c0_43] : memref<8x1xf32, #tpu.memory_space<vmem>>, vector<8x1xf32>
    %88 = vector.broadcast %87 : vector<8x1xf32> to vector<8x160xf32>
    %89 = arith.addf %86, %88 : vector<8x160xf32>
    %cst_44 = arith.constant 0.000000e+00 : f32
    %90 = vector.broadcast %cst_44 : f32 to vector<8x160xf32>
    %91 = arith.subf %90, %89 : vector<8x160xf32>
    %92 = math.exp %91 : vector<8x160xf32>
    %cst_45 = arith.constant 1.000000e+00 : f32
    %93 = vector.broadcast %cst_45 : f32 to vector<8x160xf32>
    %94 = arith.addf %93, %92 : vector<8x160xf32>
    %95 = arith.divf %89, %94 : vector<8x160xf32>
    %c17_i32 = arith.constant 17 : i32
    %96 = tpu.dynamic_rotate %95 by %c17_i32 dim 1 : vector<8x160xf32>, i32 -> vector<8x160xf32>
    %97 = arith.andi %15, %42 : vector<1x160xi1>
    %cst_46 = arith.constant 0.000000e+00 : f32
    %98 = vector.shape_cast %97 : vector<1x160xi1> to vector<1x160xi1>
    %99 = vector.broadcast %98 : vector<1x160xi1> to vector<8x160xi1>
    %100 = vector.broadcast %cst_46 : f32 to vector<8x160xf32>
    %101 = arith.select %99, %96, %100 : vector<8x160xi1>, vector<8x160xf32>
    %c0_47 = arith.constant 0 : index
    %c0_48 = arith.constant 0 : index
    %c0_49 = arith.constant 0 : index
    %102 = vector.load %arg10[%c0_47, %c0_48, %c0_49] : memref<9x8x8xf32, #tpu.memory_space<vmem>>, vector<1x8x8xf32>
    %103 = vector.shape_cast %102 : vector<1x8x8xf32> to vector<8x8xf32>
    %cst_50 = arith.constant dense<0.000000e+00> : vector<8x160xf32>
    %104 = tpu.matmul %103, %101, %cst_50 {dimension_numbers = #tpu.dot_dimension_numbers<[1], [0], [0], [1], [0, 0, 1, 1], [], []>} : vector<8x8xf32>, vector<8x160xf32>, vector<8x160xf32> -> vector<8x160xf32>
    %c16_i32_51 = arith.constant 16 : i32
    %105 = tpu.dynamic_rotate %95 by %c16_i32_51 dim 1 : vector<8x160xf32>, i32 -> vector<8x160xf32>
    %106 = arith.andi %15, %51 : vector<1x160xi1>
    %cst_52 = arith.constant 0.000000e+00 : f32
    %107 = vector.shape_cast %106 : vector<1x160xi1> to vector<1x160xi1>
    %108 = vector.broadcast %107 : vector<1x160xi1> to vector<8x160xi1>
    %109 = vector.broadcast %cst_52 : f32 to vector<8x160xf32>
    %110 = arith.select %108, %105, %109 : vector<8x160xi1>, vector<8x160xf32>
    %c1 = arith.constant 1 : index
    %c0_53 = arith.constant 0 : index
    %c0_54 = arith.constant 0 : index
    %111 = vector.load %arg10[%c1, %c0_53, %c0_54] : memref<9x8x8xf32, #tpu.memory_space<vmem>>, vector<1x8x8xf32>
    %112 = vector.shape_cast %111 : vector<1x8x8xf32> to vector<8x8xf32>
    %cst_55 = arith.constant dense<0.000000e+00> : vector<8x160xf32>
    %113 = tpu.matmul %112, %110, %cst_55 {dimension_numbers = #tpu.dot_dimension_numbers<[1], [0], [0], [1], [0, 0, 1, 1], [], []>} : vector<8x8xf32>, vector<8x160xf32>, vector<8x160xf32> -> vector<8x160xf32>
    %114 = arith.addf %104, %113 : vector<8x160xf32>
    %c15_i32 = arith.constant 15 : i32
    %115 = tpu.dynamic_rotate %95 by %c15_i32 dim 1 : vector<8x160xf32>, i32 -> vector<8x160xf32>
    %116 = arith.andi %15, %60 : vector<1x160xi1>
    %cst_56 = arith.constant 0.000000e+00 : f32
    %117 = vector.shape_cast %116 : vector<1x160xi1> to vector<1x160xi1>
    %118 = vector.broadcast %117 : vector<1x160xi1> to vector<8x160xi1>
    %119 = vector.broadcast %cst_56 : f32 to vector<8x160xf32>
    %120 = arith.select %118, %115, %119 : vector<8x160xi1>, vector<8x160xf32>
    %c2 = arith.constant 2 : index
    %c0_57 = arith.constant 0 : index
    %c0_58 = arith.constant 0 : index
    %121 = vector.load %arg10[%c2, %c0_57, %c0_58] : memref<9x8x8xf32, #tpu.memory_space<vmem>>, vector<1x8x8xf32>
    %122 = vector.shape_cast %121 : vector<1x8x8xf32> to vector<8x8xf32>
    %cst_59 = arith.constant dense<0.000000e+00> : vector<8x160xf32>
    %123 = tpu.matmul %122, %120, %cst_59 {dimension_numbers = #tpu.dot_dimension_numbers<[1], [0], [0], [1], [0, 0, 1, 1], [], []>} : vector<8x8xf32>, vector<8x160xf32>, vector<8x160xf32> -> vector<8x160xf32>
    %124 = arith.addf %114, %123 : vector<8x160xf32>
    %c1_i32_60 = arith.constant 1 : i32
    %125 = tpu.dynamic_rotate %95 by %c1_i32_60 dim 1 : vector<8x160xf32>, i32 -> vector<8x160xf32>
    %126 = arith.andi %24, %42 : vector<1x160xi1>
    %cst_61 = arith.constant 0.000000e+00 : f32
    %127 = vector.shape_cast %126 : vector<1x160xi1> to vector<1x160xi1>
    %128 = vector.broadcast %127 : vector<1x160xi1> to vector<8x160xi1>
    %129 = vector.broadcast %cst_61 : f32 to vector<8x160xf32>
    %130 = arith.select %128, %125, %129 : vector<8x160xi1>, vector<8x160xf32>
    %c3 = arith.constant 3 : index
    %c0_62 = arith.constant 0 : index
    %c0_63 = arith.constant 0 : index
    %131 = vector.load %arg10[%c3, %c0_62, %c0_63] : memref<9x8x8xf32, #tpu.memory_space<vmem>>, vector<1x8x8xf32>
    %132 = vector.shape_cast %131 : vector<1x8x8xf32> to vector<8x8xf32>
    %cst_64 = arith.constant dense<0.000000e+00> : vector<8x160xf32>
    %133 = tpu.matmul %132, %130, %cst_64 {dimension_numbers = #tpu.dot_dimension_numbers<[1], [0], [0], [1], [0, 0, 1, 1], [], []>} : vector<8x8xf32>, vector<8x160xf32>, vector<8x160xf32> -> vector<8x160xf32>
    %134 = arith.addf %124, %133 : vector<8x160xf32>
    %c4 = arith.constant 4 : index
    %c0_65 = arith.constant 0 : index
    %c0_66 = arith.constant 0 : index
    %135 = vector.load %arg10[%c4, %c0_65, %c0_66] : memref<9x8x8xf32, #tpu.memory_space<vmem>>, vector<1x8x8xf32>
    %136 = vector.shape_cast %135 : vector<1x8x8xf32> to vector<8x8xf32>
    %cst_67 = arith.constant dense<0.000000e+00> : vector<8x160xf32>
    %137 = tpu.matmul %136, %95, %cst_67 {dimension_numbers = #tpu.dot_dimension_numbers<[1], [0], [0], [1], [0, 0, 1, 1], [], []>} : vector<8x8xf32>, vector<8x160xf32>, vector<8x160xf32> -> vector<8x160xf32>
    %138 = arith.addf %134, %137 : vector<8x160xf32>
    %c159_i32 = arith.constant 159 : i32
    %139 = tpu.dynamic_rotate %95 by %c159_i32 dim 1 : vector<8x160xf32>, i32 -> vector<8x160xf32>
    %140 = arith.andi %24, %60 : vector<1x160xi1>
    %cst_68 = arith.constant 0.000000e+00 : f32
    %141 = vector.shape_cast %140 : vector<1x160xi1> to vector<1x160xi1>
    %142 = vector.broadcast %141 : vector<1x160xi1> to vector<8x160xi1>
    %143 = vector.broadcast %cst_68 : f32 to vector<8x160xf32>
    %144 = arith.select %142, %139, %143 : vector<8x160xi1>, vector<8x160xf32>
    %c5 = arith.constant 5 : index
    %c0_69 = arith.constant 0 : index
    %c0_70 = arith.constant 0 : index
    %145 = vector.load %arg10[%c5, %c0_69, %c0_70] : memref<9x8x8xf32, #tpu.memory_space<vmem>>, vector<1x8x8xf32>
    %146 = vector.shape_cast %145 : vector<1x8x8xf32> to vector<8x8xf32>
    %cst_71 = arith.constant dense<0.000000e+00> : vector<8x160xf32>
    %147 = tpu.matmul %146, %144, %cst_71 {dimension_numbers = #tpu.dot_dimension_numbers<[1], [0], [0], [1], [0, 0, 1, 1], [], []>} : vector<8x8xf32>, vector<8x160xf32>, vector<8x160xf32> -> vector<8x160xf32>
    %148 = arith.addf %138, %147 : vector<8x160xf32>
    %c145_i32 = arith.constant 145 : i32
    %149 = tpu.dynamic_rotate %95 by %c145_i32 dim 1 : vector<8x160xf32>, i32 -> vector<8x160xf32>
    %150 = arith.andi %33, %42 : vector<1x160xi1>
    %cst_72 = arith.constant 0.000000e+00 : f32
    %151 = vector.shape_cast %150 : vector<1x160xi1> to vector<1x160xi1>
    %152 = vector.broadcast %151 : vector<1x160xi1> to vector<8x160xi1>
    %153 = vector.broadcast %cst_72 : f32 to vector<8x160xf32>
    %154 = arith.select %152, %149, %153 : vector<8x160xi1>, vector<8x160xf32>
    %c6 = arith.constant 6 : index
    %c0_73 = arith.constant 0 : index
    %c0_74 = arith.constant 0 : index
    %155 = vector.load %arg10[%c6, %c0_73, %c0_74] : memref<9x8x8xf32, #tpu.memory_space<vmem>>, vector<1x8x8xf32>
    %156 = vector.shape_cast %155 : vector<1x8x8xf32> to vector<8x8xf32>
    %cst_75 = arith.constant dense<0.000000e+00> : vector<8x160xf32>
    %157 = tpu.matmul %156, %154, %cst_75 {dimension_numbers = #tpu.dot_dimension_numbers<[1], [0], [0], [1], [0, 0, 1, 1], [], []>} : vector<8x8xf32>, vector<8x160xf32>, vector<8x160xf32> -> vector<8x160xf32>
    %158 = arith.addf %148, %157 : vector<8x160xf32>
    %c144_i32 = arith.constant 144 : i32
    %159 = tpu.dynamic_rotate %95 by %c144_i32 dim 1 : vector<8x160xf32>, i32 -> vector<8x160xf32>
    %160 = arith.andi %33, %51 : vector<1x160xi1>
    %cst_76 = arith.constant 0.000000e+00 : f32
    %161 = vector.shape_cast %160 : vector<1x160xi1> to vector<1x160xi1>
    %162 = vector.broadcast %161 : vector<1x160xi1> to vector<8x160xi1>
    %163 = vector.broadcast %cst_76 : f32 to vector<8x160xf32>
    %164 = arith.select %162, %159, %163 : vector<8x160xi1>, vector<8x160xf32>
    %c7 = arith.constant 7 : index
    %c0_77 = arith.constant 0 : index
    %c0_78 = arith.constant 0 : index
    %165 = vector.load %arg10[%c7, %c0_77, %c0_78] : memref<9x8x8xf32, #tpu.memory_space<vmem>>, vector<1x8x8xf32>
    %166 = vector.shape_cast %165 : vector<1x8x8xf32> to vector<8x8xf32>
    %cst_79 = arith.constant dense<0.000000e+00> : vector<8x160xf32>
    %167 = tpu.matmul %166, %164, %cst_79 {dimension_numbers = #tpu.dot_dimension_numbers<[1], [0], [0], [1], [0, 0, 1, 1], [], []>} : vector<8x8xf32>, vector<8x160xf32>, vector<8x160xf32> -> vector<8x160xf32>
    %168 = arith.addf %158, %167 : vector<8x160xf32>
    %c143_i32 = arith.constant 143 : i32
    %169 = tpu.dynamic_rotate %95 by %c143_i32 dim 1 : vector<8x160xf32>, i32 -> vector<8x160xf32>
    %170 = arith.andi %33, %60 : vector<1x160xi1>
    %cst_80 = arith.constant 0.000000e+00 : f32
    %171 = vector.shape_cast %170 : vector<1x160xi1> to vector<1x160xi1>
    %172 = vector.broadcast %171 : vector<1x160xi1> to vector<8x160xi1>
    %173 = vector.broadcast %cst_80 : f32 to vector<8x160xf32>
    %174 = arith.select %172, %169, %173 : vector<8x160xi1>, vector<8x160xf32>
    %c8 = arith.constant 8 : index
    %c0_81 = arith.constant 0 : index
    %c0_82 = arith.constant 0 : index
    %175 = vector.load %arg10[%c8, %c0_81, %c0_82] : memref<9x8x8xf32, #tpu.memory_space<vmem>>, vector<1x8x8xf32>
    %176 = vector.shape_cast %175 : vector<1x8x8xf32> to vector<8x8xf32>
    %cst_83 = arith.constant dense<0.000000e+00> : vector<8x160xf32>
    %177 = tpu.matmul %176, %174, %cst_83 {dimension_numbers = #tpu.dot_dimension_numbers<[1], [0], [0], [1], [0, 0, 1, 1], [], []>} : vector<8x8xf32>, vector<8x160xf32>, vector<8x160xf32> -> vector<8x160xf32>
    %178 = arith.addf %168, %177 : vector<8x160xf32>
    %c0_84 = arith.constant 0 : index
    %c0_85 = arith.constant 0 : index
    %179 = vector.load %arg11[%c0_84, %c0_85] : memref<8x1xf32, #tpu.memory_space<vmem>>, vector<8x1xf32>
    %180 = vector.broadcast %179 : vector<8x1xf32> to vector<8x160xf32>
    %181 = arith.addf %178, %180 : vector<8x160xf32>
    %cst_86 = arith.constant 0.000000e+00 : f32
    %182 = vector.broadcast %cst_86 : f32 to vector<8x160xf32>
    %183 = arith.subf %182, %181 : vector<8x160xf32>
    %184 = math.exp %183 : vector<8x160xf32>
    %cst_87 = arith.constant 1.000000e+00 : f32
    %185 = vector.broadcast %cst_87 : f32 to vector<8x160xf32>
    %186 = arith.addf %185, %184 : vector<8x160xf32>
    %187 = arith.divf %181, %186 : vector<8x160xf32>
    %188 = arith.addf %73, %187 : vector<8x160xf32>
    %c0_88 = arith.constant 0 : index
    %c0_89 = arith.constant 0 : index
    %189 = vector.load %arg12[%c0_88, %c0_89] : memref<8x8xf32, #tpu.memory_space<vmem>>, vector<8x8xf32>
    %cst_90 = arith.constant dense<0.000000e+00> : vector<8x160xf32>
    %190 = tpu.matmul %189, %188, %cst_90 {dimension_numbers = #tpu.dot_dimension_numbers<[1], [0], [0], [1], [0, 0, 1, 1], [], []>} : vector<8x8xf32>, vector<8x160xf32>, vector<8x160xf32> -> vector<8x160xf32>
    %c0_91 = arith.constant 0 : index
    %c0_92 = arith.constant 0 : index
    %191 = vector.load %arg13[%c0_91, %c0_92] : memref<8x8xf32, #tpu.memory_space<vmem>>, vector<8x8xf32>
    %cst_93 = arith.constant dense<0.000000e+00> : vector<8x160xf32>
    %192 = tpu.matmul %191, %84, %cst_93 {dimension_numbers = #tpu.dot_dimension_numbers<[1], [0], [0], [1], [0, 0, 1, 1], [], []>} : vector<8x8xf32>, vector<8x160xf32>, vector<8x160xf32> -> vector<8x160xf32>
    %193 = arith.addf %190, %192 : vector<8x160xf32>
    %c0_94 = arith.constant 0 : index
    %c0_95 = arith.constant 0 : index
    %194 = vector.load %arg14[%c0_94, %c0_95] : memref<8x1xf32, #tpu.memory_space<vmem>>, vector<8x1xf32>
    %195 = vector.broadcast %194 : vector<8x1xf32> to vector<8x160xf32>
    %196 = arith.addf %193, %195 : vector<8x160xf32>
    %cst_96 = arith.constant 0.000000e+00 : f32
    %197 = vector.broadcast %cst_96 : f32 to vector<8x160xf32>
    %198 = arith.subf %197, %196 : vector<8x160xf32>
    %199 = math.exp %198 : vector<8x160xf32>
    %cst_97 = arith.constant 1.000000e+00 : f32
    %200 = vector.broadcast %cst_97 : f32 to vector<8x160xf32>
    %201 = arith.addf %200, %199 : vector<8x160xf32>
    %202 = arith.divf %196, %201 : vector<8x160xf32>
    %203 = vector.extract_strided_slice %202 {offsets = [0, 16], sizes = [8, 128], strides = [1, 1]} : vector<8x160xf32> to vector<8x128xf32>
    %c0_98 = arith.constant 0 : index
    %c0_99 = arith.constant 0 : index
    %c0_100 = arith.constant 0 : index
    %204 = vector.load %arg15[%c0_98, %c0_99, %c0_100] : memref<1x8x128xf32, #tpu.memory_space<vmem>>, vector<1x8x128xf32>
    %205 = vector.shape_cast %204 : vector<1x8x128xf32> to vector<8x128xf32>
    %206 = vector.shape_cast %203 : vector<8x128xf32> to vector<1x8x128xf32>
    tpu.vector_store %arg15[%c0_98, %c0_99, %c0_100], %206 {strides = array<i32>} : memref<1x8x128xf32, #tpu.memory_space<vmem>>, vector<1x8x128xf32>,
    return
  }
  func.func @transform_0(%arg0: i32, %arg1: i32) -> (i32, i32) {
    %c0_i32 = arith.constant 0 : i32
    %c0_i32_0 = arith.constant 0 : i32
    %c0_i32_1 = arith.constant 0 : i32
    return %c0_i32, %c0_i32_0 : i32, i32
  }
  func.func @transform_1(%arg0: i32, %arg1: i32) -> (i32, i32, i32, i32) {
    %c0_i32 = arith.constant 0 : i32
    %c0_i32_0 = arith.constant 0 : i32
    %c0_i32_1 = arith.constant 0 : i32
    return %arg0, %arg1, %c0_i32, %c0_i32_0 : i32, i32, i32, i32
  }
  func.func @transform_2(%arg0: i32, %arg1: i32) -> (i32, i32) {
    %c0_i32 = arith.constant 0 : i32
    %c0_i32_0 = arith.constant 0 : i32
    %c0_i32_1 = arith.constant 0 : i32
    return %c0_i32, %c0_i32_0 : i32, i32
  }
  func.func @transform_3(%arg0: i32, %arg1: i32) -> (i32, i32) {
    %c0_i32 = arith.constant 0 : i32
    %c0_i32_0 = arith.constant 0 : i32
    %c0_i32_1 = arith.constant 0 : i32
    return %c0_i32, %c0_i32_0 : i32, i32
  }
  func.func @transform_4(%arg0: i32, %arg1: i32) -> (i32, i32) {
    %c0_i32 = arith.constant 0 : i32
    %c0_i32_0 = arith.constant 0 : i32
    %c0_i32_1 = arith.constant 0 : i32
    return %c0_i32, %c0_i32_0 : i32, i32
  }
  func.func @transform_5(%arg0: i32, %arg1: i32) -> (i32, i32) {
    %c0_i32 = arith.constant 0 : i32
    %c0_i32_0 = arith.constant 0 : i32
    %c0_i32_1 = arith.constant 0 : i32
    return %c0_i32, %c0_i32_0 : i32, i32
  }
  func.func @transform_6(%arg0: i32, %arg1: i32) -> (i32, i32) {
    %c0_i32 = arith.constant 0 : i32
    %c0_i32_0 = arith.constant 0 : i32
    %c0_i32_1 = arith.constant 0 : i32
    return %c0_i32, %c0_i32_0 : i32, i32
  }
  func.func @transform_7(%arg0: i32, %arg1: i32) -> (i32, i32) {
    %c0_i32 = arith.constant 0 : i32
    %c0_i32_0 = arith.constant 0 : i32
    %c0_i32_1 = arith.constant 0 : i32
    return %c0_i32, %c0_i32_0 : i32, i32
  }
  func.func @transform_8(%arg0: i32, %arg1: i32) -> (i32, i32, i32) {
    %c0_i32 = arith.constant 0 : i32
    %c0_i32_0 = arith.constant 0 : i32
    %c0_i32_1 = arith.constant 0 : i32
    %c0_i32_2 = arith.constant 0 : i32
    return %c0_i32, %c0_i32_0, %c0_i32_1 : i32, i32, i32
  }
  func.func @transform_9(%arg0: i32, %arg1: i32) -> (i32, i32) {
    %c0_i32 = arith.constant 0 : i32
    %c0_i32_0 = arith.constant 0 : i32
    %c0_i32_1 = arith.constant 0 : i32
    return %c0_i32, %c0_i32_0 : i32, i32
  }
  func.func @transform_10(%arg0: i32, %arg1: i32) -> (i32, i32) {
    %c0_i32 = arith.constant 0 : i32
    %c0_i32_0 = arith.constant 0 : i32
    %c0_i32_1 = arith.constant 0 : i32
    return %c0_i32, %c0_i32_0 : i32, i32
  }
  func.func @transform_11(%arg0: i32, %arg1: i32) -> (i32, i32) {
    %c0_i32 = arith.constant 0 : i32
    %c0_i32_0 = arith.constant 0 : i32
    %c0_i32_1 = arith.constant 0 : i32
    return %c0_i32, %c0_i32_0 : i32, i32
  }
  func.func @transform_12(%arg0: i32, %arg1: i32) -> (i32, i32) {
    %c0_i32 = arith.constant 0 : i32
    %c0_i32_0 = arith.constant 0 : i32
    %c0_i32_1 = arith.constant 0 : i32
    return %c0_i32, %c0_i32_0 : i32, i32
  }
  func.func @transform_13(%arg0: i32, %arg1: i32) -> (i32, i32, i32) {
    %c0_i32 = arith.constant 0 : i32
    %c0_i32_0 = arith.constant 0 : i32
    return %arg0, %c0_i32, %arg1 : i32, i32, i32
  }
}

</mosaic_0001>

<bundles_post_ra>
// kernel: tpu_custom_call.1
= control target key start
LH: loop header
LB: loop body
LE: loop exit
PB: predicated region body
PF: predicated region fallthrough
CT: control target
= control target key end

     0   :  { %s2770_s0 = inlined_call_operand.vmem [shape: s32[2,160], index: 0, kind: input, shape index: {}]   ;;  %s2771_s1 = inlined_call_operand.vmem [shape: f32[2,2,8,160], index: 1, kind: input, shape index: {}]   ;;  %s2772_s2 = inlined_call_operand.vmem [shape: f32[8,8], index: 2, kind: input, shape index: {}]   ;;  %s2773_s3 = inlined_call_operand.vmem [shape: f32[8,1], index: 3, kind: input, shape index: {}]   ;;  %s2774_s4 = inlined_call_operand.vmem [shape: f32[8,8], index: 4, kind: input, shape index: {}]   ;;  %s2775_s5 = inlined_call_operand.vmem [shape: f32[8,1], index: 5, kind: input, shape index: {}]   ;;  %s2776_s6 = inlined_call_operand.vmem [shape: f32[8,8], index: 6, kind: input, shape index: {}]   ;;  %s2777_s7 = inlined_call_operand.vmem [shape: f32[8,1], index: 7, kind: input, shape index: {}]   ;;  %s2778_s8 = inlined_call_operand.vmem [shape: f32[9,8,8], index: 8, kind: input, shape index: {}]   ;;  %s2779_s9 = inlined_call_operand.vmem [shape: f32[8,1], index: 9, kind: input, shape index: {}]   ;;  %s2780_s10 = inlined_call_operand.vmem [shape: f32[8,8], index: 10, kind: input, shape index: {}]   ;;  %s2781_s11 = inlined_call_operand.vmem [shape: f32[8,8], index: 11, kind: input, shape index: {}]   ;;  %s2782_s12 = inlined_call_operand.vmem [shape: f32[8,1], index: 12, kind: input, shape index: {}]   ;;  %s2783_s13 = inlined_call_operand.hbm [shape: f32[2,8,256], index: 13, kind: output, shape index: {}]  }
   0x1   :  { %2791 = sst [smem:[#allocation13_spill]] %s2773_s3 }
   0x2   :  { %18 = vsyncpa [#allocation3], 0 }
   0x3   :  { %20 = vsyncpa [#allocation3 + $0x1], 0  ;;  %s2369_s25 = smov 0   ;;  %s2371_s26 = smov 0  }
   0x4   :  { %s2373_s27 = smov 0   ;;  %s2375_s28 = smov 0  }
   0x5   :  { %s2377_s29 = smov 0   ;;  %s2379_s30 = smov 0  }
   0x6   :  { %s2381_s14 = smov 0   ;;  %s2383_s15 = smov 0  }
   0x7 LB: > { %2792 = sst [smem:[#allocation5_spill]] %s2260_s25  ;;  %s2021_s16 = sadd.s32 4294967295, %s2288_s15   ;;  %s2288_s15 = sphi %s2383_s15, %s26_s15   ;;  %s2284_s14 = sphi %s2381_s14, %s2822_s14   ;;  %s2280_s30 = sphi %s2379_s30, %s2821_s30   ;;  %s2276_s29 = sphi %s2377_s29, %s2825_s29   ;;  %s2272_s28 = sphi %s2375_s28, %s2819_s28   ;;  %s2268_s27 = sphi %s2373_s27, %s2818_s27   ;;  %s2264_s26 = sphi %s2371_s26, %s2824_s26   ;;  %s2260_s25 = sphi %s2369_s25, %s2823_s25  }
   0x8   : > { %2793 = sst [smem:[#allocation6_spill]] %s2268_s27  ;;  %s2022_s17 = sadd.s32 4294967294, %s2288_s15  }
   0x9   : > { %2794 = sst [smem:[#allocation7_spill]] %s2280_s30  ;;  %s35_s18 = sadd.s32 1, %s2280_s30 }
   0xa   : > { %2795 = sst [smem:[#allocation8_spill]] %s2284_s14  ;;  %p36_p0 = scmp.ge.s32.totalorder %s35_s18, 2 }
   0xb   : > { %s38_s19 = sadd.s32 1, %s2284_s14  ;;  %p337_p1 = scmp.ne.s32.totalorder %s2268_s27, %s2264_s26 }
   0xc   : > { %p338_p2 = scmp.eq.s32.totalorder %s2021_s16, 3  ;;  %s2827_s18 = smov (%p36_p0, %s35_s18), 0 }
   0xd   : > { %2796 = sst [smem:[#allocation9_spill]] %s2827_s18  ;;  %s2829_s19 = smov (!%p36_p0, %s38_s19), %s2284_s14 }
   0xe   : > { %s323_s20 = ssub.s32 %s2280_s30, %s2827_s18  ;;  %p2420_p3 = por %p338_p2, %p337_p1 }
   0xf   : > { %p40_p4 = scmp.ge.s32.totalorder %s2829_s19, 2  ;;  %p343_p5 = scmp.ne.s32.totalorder %s2264_s26, %s2260_s25 }
  0x10   : > { %p344_p6 = scmp.eq.s32.totalorder %s2022_s17, 3  ;;  %p2025_p7 = scmp.ge.s32.totalorder %s2288_s15, 1 }
  0x11   : > { %s2831_s19 = smov (%p40_p4, %s2829_s19), 0  ;;  %p410_p9 = scmp.lt.s32.totalorder %s2288_s15, 5 }
  0x12   : > { %2798 = sst [smem:[#allocation10_spill]] %s2831_s19  ;;  %p2429_p8 = por %p344_p6, %p343_p5 }
  0x13   : > { %s322_s23 = ssub.s32 %s2284_s14, %s2831_s19  ;;  %s327_s24 = sadd.s32 1, %s2268_s27 }
  0x14   : > { %s2799_s22 = scalar_select %p2429_p8, 1, 0 }
  0x15   : > { %s324_s16 = sor.u32 %s323_s20, %s322_s23  ;;  %p411_p10 = pnand %p2025_p7, %p410_p9 }
  0x16   : > { %2800 = sst [smem:[#allocation11_spill]] %s2799_s22  ;;  %p325_p11 = scmp.eq.s32.totalorder %s324_s16, 0 }
  0x17   : > { %414 = sbr.rel (%p411_p10) target bundleno = 1478 (0x5c6), region = 72  ;;  %p458_p12 = scmp.lt.s32.totalorder (!%p411_p10), %s2276_s29, 1 }
  0x18   : > { %s2438_s18 = scalar_select %p325_p11, %s2268_s27, %s327_s24  }
  0x19   : > { %p460_p13 = scmp.lt.s32.totalorder (!%p411_p10), %s2272_s28, 1  ;;  %s2802_s3 = sld [smem:[#allocation13_spill]] (!%p411_p10) }
  0x1a   : > { %2801 = sst [smem:[#allocation12_spill]] %s2438_s18  ;;  %s2294_s22 = smov (!%p411_p10), 113  }
  0x1b   : > { %s2297_s24 = smov (!%p411_p10), 127  }
  0x1c   : > { %v2290_v0 = vmov 0.0   ;;  %v2291_v1 = vmov 0   ;;  %s459_s20 = scalar_select %p458_p12, %s2276_s29, 1  ;;  %v684_v3 = vld [vmem:[%s2777_s7] sm:$0xff]  ;;  %vm503_vm0 = vcmask 64512   ;;  %vm776_vm1 = vcmask 1047808  }
  0x1d   : > { %571 = vmatprep.mubr.f32.mxu0 %v2290_v0  ;;  %2154 = vset.pattern.permute.xlu0 %v2291_v1  ;;  %s461_s23 = scalar_select %p460_p13, %s2272_s28, 1  ;;  %v496_v6 = vld [vmem:[%s2772_s2] sm:$0xff] }
  0x1e   : > { %664 = vmatprep.mubr.f32.mxu1 %v2290_v0  ;;  %2155 = vset.pattern.permute.xlu1 %v2291_v1  ;;  %s2028_s14 = sshll.u32 %s459_s20, 2  ;;  %v683_v24 = vld [vmem:[%s2776_s6] sm:$0xff]  ;;  %s2295_s20 = smov 111  }
  0x1f   : > { %v497_v2 = vld [vmem:[%s2802_s3] sm:$0xff]  ;;  %s2027_s30 = sshll.u32 %s461_s23, 1  ;;  %s2296_s23 = smov 97  }
  0x20   : > { %500 = vperm.xlu0 %2154, %v497_v2   ;;  %s464_s18 = sadd.s32 %s2028_s14, %s2027_s30  ;;  %v590_v25 = vld [vmem:[%s2774_s4] sm:$0xff]  ;;  %s2292_s14 = smov 32  }
  0x21   : > { %s2029_s27 = sshll.u32 %s464_s18, 3  ;;  %s2293_s18 = smov 112   ;;  %v591_v45 = vld [vmem:[%s2775_s5] sm:$0xff] }
  0x22   : > { %s466_s19 = scalar_lea.vmem %s2771_s1, %s2029_s27  ;;  %v1723_v48 = vld [vmem:[%s2779_s9] sm:$0xff]  ;;  %s2030_s30 = sshll.u32 %s2272_s28, 3 }
  0x23   : > { %v495_v4 = vld [vmem:[%s466_s19 + $0x8] sm:$0xff]  ;;  %v494_v5 = vld [vmem:[%s466_s19] sm:$0xff] }
  0x24   : > { %687 = vperm.xlu0 %2154, %v684_v3   ;;  %537 = vmatprep.subr.mxu0 %v495_v4  ;;  %v1895_v49 = vld [vmem:[%s2782_s12] sm:$0xff] }
  0x25   : > { %630 = vmatprep.subr.mxu1 %v495_v4  ;;  %538 = vmatpush1.msra.mxu0 %v494_v5  ;;  %v467_v56 = vld [vmem:[%s2770_s0] sm:$0xf] }
  0x26   : > { %631 = vmatpush1.msra.mxu1 %v494_v5  ;;  %2032 = vmatmul.mubr.msk.f32.vlgmr.msra.gmra.mxu0 %vm503_vm0, %v496_v6  ;;  %vm487_vm2 = vcmp.ge.s32.totalorder %v467_v56, 0  ;;  %vm488_vm3 = vcmp.lt.s32.totalorder %v467_v56, 16  ;;  %v483_v60 = vadd.s32 4294967295, %v467_v56  ;;  %v490_v62 = vadd.s32 1, %v467_v56 }
  0x27   : > { %757 = vmatprep.mubr.f32.mxu0 %v2290_v0  ;;  %2033 = vmatmul.mubr.msk.f32.vlgmr.msra.gmra.mxu1 %vm503_vm0, %v590_v25  ;;  %vm489_vm4 = vmand %vm487_vm2, %vm488_vm3 }
  0x28   : > { %921 = vmatprep.mubr.f32.mxu1 %v2290_v0  ;;  %vm484_vm5 = vcmp.ge.s32.totalorder %v483_v60, 0  ;;  %vm485_vm6 = vcmp.lt.s32.totalorder %v483_v60, 16  ;;  %v819_v4 = vsel %vm489_vm4, 1, %v2291_v1  ;;  %vm491_vm8 = vcmp.ge.s32.totalorder %v490_v62, 0 }
  0x29   : > { %vm486_vm7 = vmand %vm484_vm5, %vm485_vm6  ;;  %vm492_vm9 = vcmp.lt.s32.totalorder %v490_v62, 16 }
  0x2a   : > { %vm493_vm12 = vmand %vm491_vm8, %vm492_vm9 }
  0x9b   : > { %v501_v7 = vpop.permute.xlu0 %500 }
  0x9f   : > { %v688_v26 = vpop.permute.xlu0 %687 }
  0xe6   : > { %v573_v8 = vpop.f32.mrf.mxu0 }
  0xe7   : > { %v574_v9 = vadd.f32 %v573_v8, %v501_v7  ;;  %v666_v59 = vpop.f32.mrf.mxu1  ;;  %v788_v8 = vlaneseq }
  0xe8   : > { %v575_v10 = vpop.f32.mrf.mxu0 }
  0xe9   : > { %v578_v11 = vsub.f32 0.0, %v574_v9  ;;  %v576_v12 = vadd.f32 %v575_v10, %v501_v7  ;;  %v668_v63 = vpop.f32.mrf.mxu1  ;;  %v820_v7 = vrot.slane %v819_v4, 7 }
  0xeb   : > { %v580_v13 = vmul.f32 1.442695, %v578_v11  ;;  %v579_v14 = vsub.f32 0.0, %v576_v12  ;;  %vm2532_vm14 = vcmp.ne.s32.totalorder %v820_v7, 0 }
  0xed   : > { %2156 = vpow2.f32 %v580_v13  ;;  %v582_v15 = vmul.f32 1.442695, %v579_v14 }
  0xef   : > { %2158 = vpow2.f32 %v582_v15  ;;  %v1002_v15 = vsel %vm493_vm12, 1, %v2291_v1 }
  0xfa   : > { %v2157_v16 = vpop.eup %2156 }
  0xfb   : > { %v584_v17 = vadd.f32 1.0, %v2157_v16  ;;  %v789_v16 = vshrl.u32 %v788_v8, 7  ;;  %v818_v8 = vld [vmem:[%s2778_s8] sm:$0xff] }
  0xfc   : > { %v2159_v18 = vpop.eup %2158 }
  0xfd   : > { %v585_v19 = vadd.f32 1.0, %v2159_v18  ;;  %2160 = vrcp.f32 %v584_v17 }
  0xff   : > { %2162 = vrcp.f32 %v585_v19  ;;  %v1003_v19 = vrot.slane %v1002_v15, 7 }
 0x101   : > { %vm2554_vm3 = vcmp.ne.s32.totalorder %v1003_v19, 0  ;;  %v2042_v19 = vld [vmem:[%s2778_s8 + $0x10] sm:$0xff] }
 0x10a   : > { %v2161_v20 = vpop.eup %2160 }
 0x10b   : > { %v2464_v23 = vmul.f32 %v2161_v20, %v574_v9  ;;  %v783_v9 = vsel %vm486_vm7, 1, %v2291_v1 }
 0x10c   : > { %v2163_v21 = vpop.eup %2162  ;;  %v784_v14 = vrot.slane %v783_v9, 7 }
 0x10d   : > { %v2462_v22 = vmul.f32 %v2163_v21, %v576_v12  ;;  %v2545_v21 = vsub.s32 3, %v789_v16 }
 0x10f   : > { %723 = vmatprep.subr.mxu0 %v2462_v22 }
 0x110   : > { %724 = vmatpush1.msra.mxu0 %v2464_v23 }
 0x111   : > { %2034 = vmatmul.mubr.msk.f32.vlgmr.msra.gmra.mxu0 %vm503_vm0, %v683_v24 }
 0x112   : > { %995 = vmatprep.mubr.f32.mxu0 %v2290_v0 }
 0x1d1   : > { %v759_v27 = vpop.f32.mrf.mxu0 }
 0x1d2   : > { %v760_v28 = vadd.f32 %v759_v27, %v688_v26 }
 0x1d3   : > { %v761_v35 = vpop.f32.mrf.mxu0 }
 0x1d4   : > { %v764_v29 = vsub.f32 0.0, %v760_v28  ;;  %v762_v36 = vadd.f32 %v761_v35, %v688_v26  ;;  %v2548_v26 = vsub.s32 1, %v789_v16 }
 0x1d6   : > { %v766_v30 = vmul.f32 1.442695, %v764_v29  ;;  %v765_v37 = vsub.f32 0.0, %v762_v36 }
 0x1d8   : > { %2164 = vpow2.f32 %v766_v30  ;;  %v768_v38 = vmul.f32 1.442695, %v765_v37 }
 0x1e5   : > { %v2165_v31 = vpop.eup %2164 }
 0x1e6   : > { %v770_v32 = vadd.f32 1.0, %v2165_v31 }
 0x1e8   : > { %2166 = vrcp.f32 %v770_v32  ;;  %v2050_v32 = vld [vmem:[%s2778_s8 + $0x20] sm:$0xff] }
 0x1e9   : > { %2168 = vpow2.f32 %v768_v38 }
 0x1f5   : > { %v2167_v33 = vpop.eup %2166 }
 0x1f6   : > { %v2478_v34 = vmul.f32 %v2167_v33, %v760_v28  ;;  %v2169_v39 = vpop.eup %2168 }
 0x1f7   : > { %v771_v40 = vadd.f32 1.0, %v2169_v39 }
 0x1f8   : > { %777 = vrot.lane.b32.xlu1 %v2478_v34, %s2292_s14 }
 0x1f9   : > { %2170 = vrcp.f32 %v771_v40 }
 0x206   : > { %v2171_v41 = vpop.eup %2170 }
 0x207   : > { %v2481_v42 = vmul.f32 %v2171_v41, %v762_v36 }
 0x26a   : > { %v778_v43 = vpop.permute.xlu1 %777 }
 0x26b   : > { %v779_v44 = vsel %vm776_vm1, %v778_v43, %v2481_v42 }
 0x26c   : > { %842 = vrot.lane.b32.xlu0 %v779_v44, %s2293_s18  ;;  %780 = vrot.lane.b32.xlu1 %v779_v44, %s2292_s14  ;;  %s2031_s14 = sadd.s32 4294967295, %s2030_s30 }
 0x26d   : > { %v470_v57 = vstv %s2031_s14 }
 0x26e   : > { %v471_v61 = vadd.s32 %v470_v57, %v467_v56 }
 0x270   : > { %808 = vrot.lane.b32.xlu0 %v779_v44, %s2294_s22  ;;  %v472_v3 = vadd.s32 4294967295, %v471_v61  ;;  %v479_v24 = vadd.s32 1, %v471_v61  ;;  %vm476_vm4 = vcmp.ge.s32.totalorder %v471_v61, 0  ;;  %vm477_vm5 = vcmp.lt.s32.totalorder %v471_v61, 16 }
 0x271   : > { %vm2565_vm9 = vmand %vm476_vm4, %vm477_vm5 }
 0x272   : > { %vm473_vm10 = vcmp.ge.s32.totalorder %v472_v3, 0  ;;  %vm474_vm11 = vcmp.lt.s32.totalorder %v472_v3, 16  ;;  %vm480_vm6 = vcmp.ge.s32.totalorder %v479_v24, 0  ;;  %vm481_vm7 = vcmp.lt.s32.totalorder %v479_v24, 16  ;;  %vm1299_vm4 = vmand %vm2565_vm9, %vm2554_vm3 }
 0x273   : > { %vm2528_vm13 = vmand %vm473_vm10, %vm474_vm11  ;;  %v1300_v4 = vsel %vm1299_vm4, 1, %v2291_v1  ;;  %vm1324_vm4 = vcmask 1039360  }
 0x274   : > { %1025 = vrot.lane.b32.xlu0 %v779_v44, %s2295_s20  ;;  %vm822_vm15 = vmand %vm2528_vm13, %vm2532_vm14 }
 0x275   : > { %v823_v25 = vsel %vm822_vm15, 1, %v2291_v1  ;;  %vm1005_vm8 = vmand %vm2528_vm13, %vm2554_vm3 }
 0x276   : > { %v831_v28 = vrot.slane %v823_v25, %v2545_v21  ;;  %v827_v30 = vrot.slane %v823_v25, %v2548_v26  ;;  %vm2569_vm10 = vmand %vm480_vm6, %vm481_vm7  ;;  %v1006_v36 = vsel %vm1005_vm8, 1, %v2291_v1  ;;  %vm812_vm8 = vcmask 924672  }
 0x277   : > { %v1014_v39 = vrot.slane %v1006_v36, %v2545_v21  ;;  %vm1513_vm7 = vmand %vm2569_vm10, %vm2532_vm14 }
 0x278   : > { %1133 = vrot.lane.b32.xlu0 %v779_v44, %s2296_s23  ;;  %v839_v33 = vrot.slane %v831_v28, %v2548_v26  ;;  %v835_v38 = vrot.slane %v827_v30, %v2548_v26  ;;  %v1514_v15 = vsel %vm1513_vm7, 1, %v2291_v1 }
 0x279   : > { %v1022_v56 = vrot.slane %v1014_v39, %v2548_v26  ;;  %v1522_v25 = vrot.slane %v1514_v15, %v2545_v21  ;;  %v1518_v30 = vrot.slane %v1514_v15, %v2548_v26 }
 0x27a   : > { %vm841_vm15 = vcmp.eq.s32.totalorder %v839_v33, 1 }
 0x27c   : > { %1320 = vrot.lane.b32.xlu0 %v2478_v34, %s2297_s24 }
 0x280   : > { %1428 = vrot.lane.b32.xlu0 %v2478_v34, %s2294_s22 }
 0x284   : > { %1638 = vrot.lane.b32.xlu0 %v2478_v34, %s2295_s20 }
 0x288   : > { %594 = vperm.xlu0 %2154, %v591_v45  }
 0x2de   : > { %v781_v46 = vpop.permute.xlu1 %780  ;;  %v2502_v50 = vpop.permute.xlu0 %842 }
 0x2df   : > { %v782_v47 = vsel %vm776_vm1, %v781_v46, %v778_v43  ;;  %vm2541_vm1 = vcmp.ne.s32.totalorder %v784_v14, 0  ;;  %v1010_v43 = vrot.slane %v1006_v36, %v2548_v26  ;;  %v1308_v14 = vrot.slane %v1300_v4, %v2545_v21 }
 0x2e0   : > { %844 = vrot.lane.b32.xlu1 %v782_v47, %s2293_s18  ;;  %vm786_vm2 = vmand %vm2528_vm13, %vm2541_vm1  ;;  %vm846_vm13 = vcmask 916480  }
 0x2e1   : > { %v787_v29 = vsel %vm786_vm2, 1, %v2291_v1  ;;  %vm1113_vm11 = vmand %vm2565_vm9, %vm2541_vm1  ;;  %vm840_vm2 = vcmp.eq.s32.totalorder %v835_v38, 1  ;;  %v1018_v62 = vrot.slane %v1010_v43, %v2548_v26  ;;  %vm1024_vm9 = vcmp.eq.s32.totalorder %v1022_v56, 1  ;;  %v2056_v38 = vld [vmem:[%s2778_s8 + $0x30] sm:$0xff] }
 0x2e2   : > { %v2504_v51 = vpop.permute.xlu0 %808  ;;  %v795_v35 = vrot.slane %v787_v29, %v2545_v21  ;;  %v791_v37 = vrot.slane %v787_v29, %v2548_v26  ;;  %vm1408_vm12 = vmand %vm2569_vm10, %vm2541_vm1  ;;  %v1316_v28 = vrot.slane %v1308_v14, %v2548_v26 }
 0x2e3   : > { %v1409_v45 = vsel %vm1408_vm12, 1, %v2291_v1  ;;  %vm1618_vm1 = vmand %vm2569_vm10, %vm2554_vm3  ;;  %vm1023_vm14 = vcmp.eq.s32.totalorder %v1018_v62, 1  ;;  %vm1029_vm3 = vcmask 908288   ;;  %vm1137_vm10 = vcmask 793600  }
 0x2e4   : > { %810 = vrot.lane.b32.xlu1 %v782_v47, %s2294_s22  ;;  %v803_v40 = vrot.slane %v795_v35, %v2548_v26  ;;  %v799_v41 = vrot.slane %v791_v37, %v2548_v26  ;;  %v1417_v60 = vrot.slane %v1409_v45, %v2545_v21  ;;  %v1619_v3 = vsel %vm1618_vm1, 1, %v2291_v1  ;;  %v2052_v37 = vld [vmem:[%s2778_s8 + $0x28] sm:$0xff]  ;;  %s455_s22 = sand.u32 1, %s2264_s26  }
 0x2e5   : > { %v1627_v13 = vrot.slane %v1619_v3, %v2545_v21  ;;  %v1623_v24 = vrot.slane %v1619_v3, %v2548_v26 }
 0x2e6   : > { %v2506_v52 = vpop.permute.xlu0 %1025  ;;  %vm805_vm5 = vcmp.eq.s32.totalorder %v803_v40, 1  ;;  %vm804_vm6 = vcmp.eq.s32.totalorder %v799_v41, 1  ;;  %v1425_v12 = vrot.slane %v1417_v60, %v2548_v26  ;;  %v2060_v40 = vld [vmem:[%s2778_s8 + $0x38] sm:$0xff]  ;;  %v2064_v41 = vld [vmem:[%s2778_s8 + $0x40] sm:$0xff] }
 0x2e7   : > { %v1635_v27 = vrot.slane %v1627_v13, %v2548_v26  ;;  %v1631_v33 = vrot.slane %v1623_v24, %v2548_v26 }
 0x2e8   : > { %1027 = vrot.lane.b32.xlu1 %v782_v47, %s2295_s20  ;;  %vm1427_vm12 = vcmp.eq.s32.totalorder %v1425_v12, 1  ;;  %s2026_s20 = sshll.u32 %s455_s22, 3 }
 0x2e9   : > { %vm1637_vm1 = vcmp.eq.s32.totalorder %v1635_v27, 1  ;;  %s457_s19 = scalar_lea.vmem [#allocation2], %s2026_s20 }
 0x2ea   : > { %v2508_v53 = vpop.permute.xlu0 %1133  ;;  %s1940_s17 = sshll.u32 %s457_s19, 4  ;;  %s1941_s17 = int_to_ptr.vmem [resolvable:$true] %s1940_s17 }
 0x2eb   : > { %s2196_s30 = scalar_lea.vmem %s1941_s17, 128 }
 0x2ec   : > { %1135 = vrot.lane.b32.xlu1 %v782_v47, %s2296_s23  ;;  %s2071_s23 = sshll.u32 %s2276_s29, 1  ;;  %p2197_p0 = scmp.ne.s32.totalorder %s1941_s17, %s2196_s30 }
 0x2ee   : > { %v2510_v54 = vpop.permute.xlu0 %1320  ;;  %p2198_p1 = pnand %p2197_p0, %p2420_p3 }
 0x2f0   : > { %1322 = vrot.lane.b32.xlu1 %v779_v44, %s2297_s24  ;;  %v1114_v44 = vsel %vm1113_vm11, 1, %v2291_v1  ;;  %s1936_s24 = sadd.s32 %s2272_s28, %s2071_s23  ;;  %p2199_p2 = pneg %p2198_p1 }
 0x2f1   : > { %s2072_s16 = sshll.u32 %s1936_s24, 7  ;;  %s2298_s28 = smov [#allocation2]  }
 0x2f2   : > { %v2513_v55 = vpop.permute.xlu0 %1428  ;;  %s2723_s27 = scalar_lea.hbm %s2783_s13, %s2072_s16  ;;  %s2200_s29 = sshll.u32 %s2298_s28, 4  ;;  %s2201_s29 = int_to_ptr.vmem [resolvable:$false] %s2200_s29 }
 0x2f3   : > { %v1430_v35 = vsel %vm812_vm8, %v2513_v55, %v2504_v51  ;;  %s2202_s14 = scalar_lea.vmem %s2201_s29, 256  ;;  %p2203_p4 = scmp.lt.s32.totalorder %s1941_s17, %s2201_s29 }
 0x2f4   : > { %1533 = vrot.lane.b32.xlu1 %v2478_v34, %s2293_s18  ;;  %p2204_p5 = scmp.lt.s32.totalorder %s2202_s14, %s2196_s30 }
 0x2f6   : > { %v2518_v58 = vpop.permute.xlu0 %1638  ;;  %p2205_p6 = por %p2204_p5, %p2203_p4 }
 0x2f8   : > { %1726 = vperm.xlu1 %2155, %v1723_v48   ;;  %p2206_p7 = pnand %p2205_p6, %p2199_p2 }
 0x2fc   : > { %1898 = vperm.xlu1 %2155, %v1895_v49   ;;  %v2035_v49 = vld [vmem:[%s2778_s8 + $0x8] sm:$0xff] }
 0x303   : > { %v595_v2 = vpop.permute.xlu0 %594 }
 0x304   : > { %v2521_v5 = vadd.f32 %v668_v63, %v595_v2  ;;  %v2523_v6 = vadd.f32 %v666_v59, %v595_v2  ;;  %v1122_v59 = vrot.slane %v1114_v44, %v2545_v21  ;;  %v1118_v2 = vrot.slane %v1114_v44, %v2548_v26  ;;  %v2046_v21 = vld [vmem:[%s2778_s8 + $0x18] sm:$0xff] }
 0x306   : > { %v672_v10 = vsub.f32 0.0, %v2521_v5  ;;  %v671_v11 = vsub.f32 0.0, %v2523_v6  ;;  %v1126_v16 = vrot.slane %v1118_v2, %v2548_v26 }
 0x308   : > { %v675_v17 = vmul.f32 1.442695, %v672_v10  ;;  %v673_v18 = vmul.f32 1.442695, %v671_v11  ;;  %v1130_v10 = vrot.slane %v1122_v59, %v2548_v26  ;;  %v1413_v11 = vrot.slane %v1409_v45, %v2548_v26 }
 0x30a   : > { %2172 = vpow2.f32 %v675_v17  ;;  %v1304_v17 = vrot.slane %v1300_v4, %v2548_v26  ;;  %v1421_v20 = vrot.slane %v1413_v11, %v2548_v26  ;;  %vm1132_vm11 = vcmp.eq.s32.totalorder %v1130_v10, 1 }
 0x30b   : > { %2174 = vpow2.f32 %v673_v18 }
 0x30c   : > { %v1312_v29 = vrot.slane %v1304_v17, %v2548_v26 }
 0x317   : > { %v2173_v46 = vpop.eup %2172 }
 0x318   : > { %v2175_v47 = vpop.eup %2174  ;;  %v678_v61 = vadd.f32 1.0, %v2173_v46 }
 0x319   : > { %v677_v63 = vadd.f32 1.0, %v2175_v47 }
 0x31a   : > { %2176 = vrcp.f32 %v678_v61 }
 0x31b   : > { %2178 = vrcp.f32 %v677_v63 }
 0x327   : > { %v2177_v55 = vpop.eup %2176 }
 0x328   : > { %v2179_v39 = vpop.eup %2178 }
 0x329   : > { %v680_v43 = vmul.f32 %v2179_v39, %v2523_v6 }
 0x352   : > { %v845_v48 = vpop.permute.xlu1 %844 }
 0x353   : > { %v847_v57 = vsel %vm846_vm13, %v2502_v50, %v845_v48  ;;  %2036 = vmatprep.subr.msk.mxu1 %vm841_vm15, %v845_v48  ;;  %vm1131_vm15 = vcmp.eq.s32.totalorder %v1126_v16, 1 }
 0x354   : > { %2037 = vmatpush1.msk.msra.mxu1 %vm840_vm2, %v847_v57  ;;  %vm1426_vm2 = vcmp.eq.s32.totalorder %v1421_v20, 1 }
 0x355   : > { %2038 = vmatmul.mubr.msk.f32.vlgmr.msra.gmra.mxu1 %vm503_vm0, %v2035_v49 }
 0x356   : > { %v811_v7 = vpop.permute.xlu1 %810  ;;  %1104 = vmatprep.mubr.f32.mxu1 %v2290_v0 }
 0x357   : > { %v813_v9 = vsel %vm812_vm8, %v2504_v51, %v811_v7  ;;  %2039 = vmatprep.subr.msk.mxu0 %vm805_vm5, %v811_v7  ;;  %vm1318_vm5 = vcmp.eq.s32.totalorder %v1316_v28, 1  ;;  %vm1636_vm8 = vcmp.eq.s32.totalorder %v1631_v33, 1 }
 0x358   : > { %2040 = vmatpush1.msk.msra.mxu0 %vm804_vm6, %v813_v9  ;;  %vm1317_vm6 = vcmp.eq.s32.totalorder %v1312_v29, 1 }
 0x359   : > { %2041 = vmatmul.mubr.msk.f32.vlgmr.msra.gmra.mxu0 %vm503_vm0, %v818_v8 }
 0x35a   : > { %v1028_v18 = vpop.permute.xlu1 %1027  ;;  %1212 = vmatprep.mubr.f32.mxu0 %v2290_v0 }
 0x35b   : > { %v1030_v1 = vsel %vm1029_vm3, %v2506_v52, %v1028_v18  ;;  %2043 = vmatprep.subr.msk.mxu1 %vm1024_vm9, %v1028_v18 }
 0x35c   : > { %2044 = vmatpush1.msk.msra.mxu1 %vm1023_vm14, %v1030_v1 }
 0x35d   : > { %2045 = vmatmul.mubr.msk.f32.vlgmr.msra.gmra.mxu1 %vm503_vm0, %v2042_v19  ;;  %1256 = vmatprep.subr.mxu1 %v2481_v42 }
 0x35e   : > { %1257 = vmatpush1.msra.mxu1 %v2478_v34  ;;  %v1136_v31 = vpop.permute.xlu1 %1135  ;;  %1290 = vmatprep.mubr.f32.mxu1 %v2290_v0  ;;  %v1530_v34 = vrot.slane %v1522_v25, %v2548_v26 }
 0x35f   : > { %v1138_v42 = vsel %vm1137_vm10, %v2508_v53, %v1136_v31  ;;  %2047 = vmatprep.subr.msk.mxu0 %vm1132_vm11, %v1136_v31  ;;  %2057 = vmatprep.subr.msk.mxu1 %vm1427_vm12, %v2504_v51  ;;  %v1526_v53 = vrot.slane %v1518_v30, %v2548_v26  ;;  %v1640_v26 = vsel %vm1029_vm3, %v2518_v58, %v2506_v52 }
 0x360   : > { %2048 = vmatpush1.msk.msra.mxu0 %vm1131_vm15, %v1138_v42  ;;  %vm1532_vm7 = vcmp.eq.s32.totalorder %v1530_v34, 1  ;;  %v682_v58 = vmul.f32 %v2177_v55, %v2521_v5 }
 0x361   : > { %2049 = vmatmul.mubr.msk.f32.vlgmr.msra.gmra.mxu0 %vm503_vm0, %v2046_v21  ;;  %2051 = vmatmul.mubr.msk.f32.vlgmr.msra.gmra.mxu1 %vm503_vm0, %v2050_v32  ;;  %vm1531_vm9 = vcmp.eq.s32.totalorder %v1526_v53, 1 }
 0x362   : > { %2058 = vmatpush1.msk.msra.mxu1 %vm1426_vm2, %v1430_v35  ;;  %v1323_v36 = vpop.permute.xlu1 %1322  ;;  %1399 = vmatprep.mubr.f32.mxu0 %v2290_v0 }
 0x363   : > { %2065 = vmatprep.subr.msk.mxu1 %vm1637_vm1, %v2506_v52  ;;  %v1325_v51 = vsel %vm1324_vm4, %v2510_v54, %v1323_v36  ;;  %2053 = vmatprep.subr.msk.mxu0 %vm1318_vm5, %v1323_v36 }
 0x364   : > { %2054 = vmatpush1.msk.msra.mxu0 %vm1317_vm6, %v1325_v51  ;;  %1504 = vmatprep.mubr.f32.mxu1 %v2290_v0  ;;  %v1745_v51 = vld [vmem:[%s2780_s10] sm:$0xff] }
 0x365   : > { %2055 = vmatmul.mubr.msk.f32.vlgmr.msra.gmra.mxu0 %vm503_vm0, %v2052_v37  ;;  %2059 = vmatmul.mubr.msk.f32.vlgmr.msra.gmra.mxu1 %vm503_vm0, %v2056_v38 }
 0x366   : > { %2061 = vmatprep.subr.msk.mxu0 %vm1532_vm7, %v2502_v50  ;;  %2066 = vmatpush1.msk.msra.mxu1 %vm1636_vm8, %v1640_v26  ;;  %v1534_v54 = vpop.permute.xlu1 %1533 }
 0x367   : > { %v1535_v52 = vsel %vm846_vm13, %v1534_v54, %v2502_v50  ;;  %1609 = vmatprep.mubr.f32.mxu0 %v2290_v0  ;;  %1714 = vmatprep.mubr.f32.mxu1 %v2290_v0  ;;  %v1746_v50 = vld [vmem:[%s2781_s11] sm:$0xff] }
 0x368   : > { %2062 = vmatpush1.msk.msra.mxu0 %vm1531_vm9, %v1535_v52 }
 0x369   : > { %2063 = vmatmul.mubr.msk.f32.vlgmr.msra.gmra.mxu0 %vm503_vm0, %v2060_v40  ;;  %2067 = vmatmul.mubr.msk.f32.vlgmr.msra.gmra.mxu1 %vm503_vm0, %v2064_v41 }
 0x36a   : > { %1780 = vmatprep.subr.mxu0 %v682_v58  ;;  %1814 = vmatprep.mubr.f32.mxu0 %v2290_v0 }
 0x36b   : > { %1781 = vmatpush1.msra.mxu0 %v680_v43  ;;  %1888 = vmatprep.mubr.f32.mxu1 %v2290_v0 }
 0x36d   : > { %2068 = vmatmul.mubr.msk.f32.vlgmr.msra.gmra.mxu0 %vm503_vm0, %v1746_v50 }
 0x373   : > { %v1727_v20 = vpop.permute.xlu1 %1726 }
 0x377   : > { %v1899_v39 = vpop.permute.xlu1 %1898 }
 0x415   : > { %v923_v5 = vpop.f32.mrf.mxu1 }
 0x417   : > { %v925_v45 = vpop.f32.mrf.mxu1 }
 0x419   : > { %v997_v44 = vpop.f32.mrf.mxu0 }
 0x41a   : > { %v998_v6 = vadd.f32 %v997_v44, %v923_v5 }
 0x41b   : > { %v999_v46 = vpop.f32.mrf.mxu0 }
 0x41c   : > { %v1000_v49 = vadd.f32 %v999_v46, %v925_v45 }
 0x41d   : > { %v1106_v47 = vpop.f32.mrf.mxu1 }
 0x41e   : > { %v1111_v56 = vadd.f32 %v1106_v47, %v998_v6 }
 0x41f   : > { %v1108_v48 = vpop.f32.mrf.mxu1 }
 0x420   : > { %v1112_v60 = vadd.f32 %v1108_v48, %v1000_v49 }
 0x421   : > { %v1214_v57 = vpop.f32.mrf.mxu0  ;;  %v1292_v59 = vpop.f32.mrf.mxu1 }
 0x422   : > { %v1219_v61 = vadd.f32 %v1214_v57, %v1111_v56 }
 0x423   : > { %v1216_v0 = vpop.f32.mrf.mxu0  ;;  %v1294_v62 = vpop.f32.mrf.mxu1 }
 0x424   : > { %v1297_v63 = vadd.f32 %v1292_v59, %v1219_v61  ;;  %v1220_v2 = vadd.f32 %v1216_v0, %v1112_v60 }
 0x425   : > { %v1401_v3 = vpop.f32.mrf.mxu0  ;;  %v1506_v4 = vpop.f32.mrf.mxu1 }
 0x426   : > { %v1298_v7 = vadd.f32 %v1294_v62, %v1220_v2  ;;  %v1406_v8 = vadd.f32 %v1401_v3, %v1297_v63 }
 0x427   : > { %v1403_v9 = vpop.f32.mrf.mxu0  ;;  %v1508_v10 = vpop.f32.mrf.mxu1 }
 0x428   : > { %v1511_v11 = vadd.f32 %v1506_v4, %v1406_v8  ;;  %v1407_v12 = vadd.f32 %v1403_v9, %v1298_v7 }
 0x429   : > { %v1611_v13 = vpop.f32.mrf.mxu0  ;;  %v1716_v14 = vpop.f32.mrf.mxu1 }
 0x42a   : > { %v1512_v15 = vadd.f32 %v1508_v10, %v1407_v12  ;;  %v1616_v16 = vadd.f32 %v1611_v13, %v1511_v11 }
 0x42b   : > { %v1613_v17 = vpop.f32.mrf.mxu0  ;;  %v1718_v1 = vpop.f32.mrf.mxu1 }
 0x42c   : > { %v1721_v18 = vadd.f32 %v1716_v14, %v1616_v16  ;;  %v1617_v19 = vadd.f32 %v1613_v17, %v1512_v15 }
 0x42d   : > { %v1816_v55 = vpop.f32.mrf.mxu0 }
 0x42e   : > { %v1722_v24 = vadd.f32 %v1718_v1, %v1617_v19  ;;  %v1729_v25 = vadd.f32 %v1727_v20, %v1721_v18 }
 0x42f   : > { %v1818_v40 = vpop.f32.mrf.mxu0 }
 0x430   : > { %v1730_v27 = vadd.f32 %v1727_v20, %v1722_v24  ;;  %v1731_v28 = vsub.f32 0.0, %v1729_v25 }
 0x432   : > { %v1732_v29 = vsub.f32 0.0, %v1730_v27  ;;  %v1733_v30 = vmul.f32 1.442695, %v1731_v28 }
 0x434   : > { %2180 = vpow2.f32 %v1733_v30  ;;  %v1735_v31 = vmul.f32 1.442695, %v1732_v29 }
 0x436   : > { %2182 = vpow2.f32 %v1735_v31 }
 0x441   : > { %v2181_v21 = vpop.eup %2180 }
 0x442   : > { %v1737_v32 = vadd.f32 1.0, %v2181_v21 }
 0x443   : > { %v2183_v42 = vpop.eup %2182 }
 0x444   : > { %v1738_v34 = vadd.f32 1.0, %v2183_v42  ;;  %2184 = vrcp.f32 %v1737_v32 }
 0x446   : > { %2186 = vrcp.f32 %v1738_v34 }
 0x451   : > { %v2185_v33 = vpop.eup %2184 }
 0x452   : > { %v1740_v53 = vmul.f32 %v2185_v33, %v1729_v25 }
 0x453   : > { %v2187_v35 = vpop.eup %2186 }
 0x454   : > { %v1742_v36 = vmul.f32 %v2187_v35, %v1730_v27  ;;  %v1743_v38 = vadd.f32 %v1740_v53, %v2464_v23 }
 0x456   : > { %v1744_v37 = vadd.f32 %v1742_v36, %v2462_v22 }
 0x458   : > { %1854 = vmatprep.subr.mxu1 %v1744_v37 }
 0x459   : > { %1855 = vmatpush1.msra.mxu1 %v1743_v38 }
 0x45a   : > { %2069 = vmatmul.mubr.msk.f32.vlgmr.msra.gmra.mxu1 %vm503_vm0, %v1745_v51 }
 0x51a   : > { %v1890_v26 = vpop.f32.mrf.mxu1 }
 0x51b   : > { %v1891_v54 = vadd.f32 %v1890_v26, %v1816_v55 }
 0x51c   : > { %v1892_v41 = vpop.f32.mrf.mxu1 }
 0x51d   : > { %v1901_v52 = vadd.f32 %v1899_v39, %v1891_v54  ;;  %v1893_v58 = vadd.f32 %v1892_v41, %v1818_v40 }
 0x51f   : > { %v1903_v43 = vsub.f32 0.0, %v1901_v52  ;;  %v1902_v22 = vadd.f32 %v1899_v39, %v1893_v58 }
 0x521   : > { %v1905_v50 = vmul.f32 1.442695, %v1903_v43  ;;  %v1904_v23 = vsub.f32 0.0, %v1902_v22 }
 0x523   : > { %2188 = vpow2.f32 %v1905_v50  ;;  %v1907_v5 = vmul.f32 1.442695, %v1904_v23 }
 0x525   : > { %2190 = vpow2.f32 %v1907_v5 }
 0x530   : > { %v2189_v44 = vpop.eup %2188 }
 0x531   : > { %v1909_v45 = vadd.f32 1.0, %v2189_v44 }
 0x532   : > { %v2191_v6 = vpop.eup %2190 }
 0x533   : > { %2192 = vrcp.f32 %v1909_v45  ;;  %v1910_v46 = vadd.f32 1.0, %v2191_v6 }
 0x535   : > { %2194 = vrcp.f32 %v1910_v46 }
 0x540   : > { %v2193_v47 = vpop.eup %2192 }
 0x541   : > { %v1912_v48 = vmul.f32 %v2193_v47, %v1901_v52 }
 0x542   : > { %v2195_v49 = vpop.eup %2194 }
 0x543   : > { %1917 = vrot.lane.b32.xlu0 %v1912_v48, %s2293_s18  ;;  %v1914_v56 = vmul.f32 %v2195_v49, %v1902_v22 }
 0x545   : > { %1919 = vrot.lane.b32.xlu1 %v1914_v56, %s2293_s18  ;;  %s1925_s18 = scalar_lea.sflag [#allocation3], %s455_s22 }
 0x5b5   : > { %v1918_v57 = vpop.permute.xlu0 %1917 }
 0x5b7   : > { %v1920_v59 = vpop.permute.xlu1 %1919 }
 0x5b8   : > { %v1921_v60 = vsel %vm846_vm13, %v1918_v57, %v1920_v59 }
 0x5b9   : > { %1923 = vst [vmem:[%s457_s19] sm:$0xff] %v1921_v60 }
 0x5ba   : > { %2209 = shalt.err (!%p2206_p7)
}
 0x5bb   : > { %s2210_s20 = scalar_lea.hbm %s2723_s27, 128  ;;  %s2214_s24 = scalar_lea.hbm %s2783_s13, 512 }
 0x5bc   : > { %p2211_p9 = scmp.ne.s32.totalorder %s2723_s27, %s2210_s20  ;;  %p2215_p12 = scmp.lt.s32.totalorder %s2723_s27, %s2783_s13 }
 0x5bd   : > { %p2216_p13 = scmp.lt.s32.totalorder %s2214_s24, %s2210_s20 }
 0x5be   : > { %p2212_p10 = pnand %p2211_p9, %p2420_p3 }
 0x5bf   : > { %p2217_p0 = por %p2216_p13, %p2215_p12 }
 0x5c0   : > { %p2213_p11 = pneg %p2212_p10 }
 0x5c2   : > { %p2218_p1 = pnand %p2217_p0, %p2213_p11 }
 0x5c4   : > { %2221 = shalt.err (!%p2218_p1)
}
 0x5c5   : > { %2075 = dma.vmem_to_hbm [thread:$0]  (%p2420_p3), %s1941_s17, 128, %s2723_s27, %s1925_s18  }
 0x5c6 PF: > { %s2815_s3 = sld [smem:[#allocation5_spill]]  ;;  %p2081_p2 = scmp.ge.s32.totalorder %s2288_s15, 2 }
 0x5c8   : > { %p2078_p4 = pnand %p2081_p2, %p2429_p8 }
 0x5ca   : > { %p2079_p5 = pneg %p2078_p4 }
 0x5cc   : > { %s1952_s30 = sand.u32 1, %s2815_s3  }
 0x5cd   : > { %s1953_s28 = scalar_lea.sflag [#allocation3], %s1952_s30 }
 0x5ce   : > { %2255 = dma.done.wait (%p2079_p5), %s1953_s28, 128  }
 0x5cf   : > { %2257 = vsyncadd (%p2079_p5), %s1953_s28, 4294967168  ;;  %s26_s15 = sadd.s32 1, %s2288_s15   ;;  %s2817_s29 = sld [smem:[#allocation6_spill]] }
 0x5d0   : > { %p23_p6 = scmp.ge.s32.totalorder %s26_s15, 6   ;;  %s2818_s27 = sld [smem:[#allocation12_spill]] }
 0x5d1   : > { %s2819_s28 = sld [smem:[#allocation7_spill]]  ;;  %s2823_s25 = smov %s2264_s26 }
 0x5d2   : > { %s2820_s21 = sld [smem:[#allocation8_spill]] }
 0x5d3   : > { %s2821_s30 = sld [smem:[#allocation9_spill]] }
 0x5d4   : > { %s2822_s14 = sld [smem:[#allocation10_spill]]  ;;  %25 = sbr.rel (!%p23_p6) target bundleno = 7 (0x7), region = 115 }
 0x5d5   : > { %s2824_s26 = smov %s2817_s29 }
 0x5d8   : > { %s2825_s29 = smov %s2820_s21 }
 0x5d9   :  { %1958 = vsyncpa [#allocation3], 1 }
 0x5da   :  { %1960 = vsyncpa [#allocation3 + $0x1], 1 }

</bundles_post_ra>
